<compile_context>
chip_gen: v6e
topology: v6e:2x2x1
jax: 0.10.0
libtpu: 0.0.40
codegen_flags: <defaults>
</compile_context>

<pallas_src>
import functools

import jax
import jax.numpy as jnp
from jax.experimental import pallas as pl
from jax.experimental.pallas import tpu as pltpu


# ------------------------------ small helpers --------------------------------

def _round_up(x, m):
    return (x + m - 1) // m * m


def _pick_tile(total, max_tile, step):
    """Largest multiple of `step` that divides `total`, capped at `max_tile`."""
    t = min(total, max_tile)
    t = max(step, (t // step) * step)
    while total % t != 0:
        t -= step
    return t


# ------------------------------ Pallas kernel --------------------------------

def _euler_cell_kernel(x_ref, hk_ref, hres_ref, win_ref, wrec_ref, bias_ref,
                       out_ref, acc_ref, *, epsilon, nonlin):
    """One (bm, bn) output tile of  out = h + act(x@Win + b + h@Wrec) * eps.

    Grid = (M tiles, N tiles, K tiles); K (reduction over U_pad) is innermost.
    x@Win + bias is folded into the accumulator init (I is tiny), so the
    streamed reduction is over Wrec only.
    """
    k = pl.program_id(2)

    @pl.when(k == 0)
    def _init():
        x = x_ref[...].astype(jnp.bfloat16)
        acc_ref[...] = (jnp.dot(x, win_ref[...],
                                preferred_element_type=jnp.float32)
                        + bias_ref[...])

    hk = hk_ref[...].astype(jnp.bfloat16)
    acc_ref[...] += jnp.dot(hk, wrec_ref[...],
                            preferred_element_type=jnp.float32)

    @pl.when(k == pl.num_programs(2) - 1)
    def _finalize():
        if nonlin == "identity":
            act = acc_ref[...]
        else:                                   # 'tanh'
            act = jnp.tanh(acc_ref[...])
        out_ref[...] = (hres_ref[...] + act * epsilon).astype(out_ref.dtype)


# ------------------- one-time parameter preparation (host) -------------------

def prepare_euler_reservoir_params(kernel, recurrent_kernel, bias, epsilon,
                                   nonlin="tanh", weight_dtype=jnp.bfloat16):
    """Pad + cast the static parameters ONCE, outside the per-step path."""
    kernel = jnp.asarray(kernel, jnp.float32)
    recurrent_kernel = jnp.asarray(recurrent_kernel, jnp.float32)
    bias = jnp.asarray(bias, jnp.float32).reshape(-1)

    I, U = kernel.shape
    I_pad = _round_up(max(I, 1), 16)     # bf16 sublane only -- no 128-row slab
    U_pad = _round_up(U, 128)            # lane-dense output / reduction axis

    w_in = (jnp.zeros((I_pad, U_pad), jnp.float32)
            .at[:I, :U].set(kernel).astype(weight_dtype))
    w_rec = (jnp.zeros((U_pad, U_pad), jnp.float32)
             .at[:U, :U].set(recurrent_kernel).astype(weight_dtype))
    bias_p = jnp.zeros((1, U_pad), jnp.float32).at[0, :U].set(bias)

    return dict(w_in=w_in, w_rec=w_rec, bias=bias_p,
                epsilon=float(epsilon), nonlin=nonlin,
                input_size=I, units=U, i_pad=I_pad, u_pad=U_pad)


# ------------------------------ forward wrapper -------------------------------

_RESIDENT_WEIGHT_BUDGET = 12 * 1024 * 1024   # single-copy fused-weight bytes
_VMEM_LIMIT = 48 * 1024 * 1024               # < v7x's 64 MiB physical VMEM


def make_euler_cell(params):
    """Returns a jitted step(xt, h_prev) -> (ht, ht), matching the module."""
    w_in, w_rec, bias = params["w_in"], params["w_rec"], params["bias"]
    epsilon, nonlin = params["epsilon"], params["nonlin"]
    I, U = params["input_size"], params["units"]
    I_pad, U_pad = params["i_pad"], params["u_pad"]

    weight_bytes = (w_in.size + w_rec.size) * jnp.dtype(w_in.dtype).itemsize
    if weight_bytes <= _RESIDENT_WEIGHT_BUDGET:
        # Weights fully VMEM-resident; grid degenerates to (M, 1, 1) and the
        # weights are fetched from HBM exactly once (constant index_map).
        bn = U_pad
        bk = U_pad
    else:
        # Large-reservoir fallback: big streamed tiles (still far below the
        # overhead-bound 256/512 of v2).
        bn = _pick_tile(U_pad, 512, 128)
        bk = _pick_tile(U_pad, 1024, 128)
        # TODO(synk): on v7x, fp8 weights would double the resident-U range.

    kern = functools.partial(_euler_cell_kernel, epsilon=epsilon, nonlin=nonlin)

    @jax.jit
    def step(xt, h_prev):
        B = xt.shape[0]
        B_pad = _round_up(B, 8)
        bm = _pick_tile(B_pad, 256, 8)
        grid = (B_pad // bm, U_pad // bn, U_pad // bk)

        x_pad = jnp.zeros((B_pad, I_pad), jnp.float32).at[:B, :I].set(xt)
        h_pad = jnp.zeros((B_pad, U_pad), jnp.float32).at[:B, :U].set(h_prev)

        out = pl.pallas_call(
            kern,
            out_shape=jax.ShapeDtypeStruct((B_pad, U_pad), jnp.float32),
            grid=grid,
            in_specs=[
                pl.BlockSpec((bm, I_pad), lambda i, j, k: (i, 0)),   # x (f32)
                pl.BlockSpec((bm, bk),    lambda i, j, k: (i, k)),   # h (reduction)
                pl.BlockSpec((bm, bn),    lambda i, j, k: (i, j)),   # h (residual)
                pl.BlockSpec((I_pad, bn), lambda i, j, k: (0, j)),   # Win  (bf16)
                pl.BlockSpec((bk, bn),    lambda i, j, k: (k, j)),   # Wrec (bf16)
                pl.BlockSpec((1, bn),     lambda i, j, k: (0, j)),   # bias (f32)
            ],
            out_specs=pl.BlockSpec((bm, bn), lambda i, j, k: (i, j)),
            scratch_shapes=[pltpu.VMEM((bm, bn), jnp.float32)],      # f32 acc
            compiler_params=pltpu.CompilerParams(
                dimension_semantics=("parallel", "parallel", "arbitrary"),
                vmem_limit_bytes=_VMEM_LIMIT),
        )(x_pad, h_pad, h_pad, w_in, w_rec, bias)

        ht = out[:B, :U]
        return ht, ht

    return step


# ------------------------ deterministic parameter init ------------------------

def sparse_tensor_init(key, M, N, C=1):
    """Dense (M, N) matrix; each row has C distinct nonzeros uniform in [-1, 1]."""
    k_idx, k_val = jax.random.split(key)
    idx = jnp.argsort(jax.random.uniform(k_idx, (M, N)), axis=1)[:, :C]
    vals = 2.0 * jax.random.uniform(k_val, (M, C), jnp.float32) - 1.0
    rows = jnp.arange(M)[:, None]
    return jnp.zeros((M, N), jnp.float32).at[rows, idx].set(vals)


def skewsymmetric(key, units, recur_scaling):
    W = recur_scaling * (2.0 * jax.random.uniform(key, (units, units),
                                                  jnp.float32) - 1.0)
    return W - W.T


def build_euler_reservoir_params(key, input_size, units,
                                 input_scaling=1.0,
                                 connectivity_input=10,
                                 bias_bool=True,
                                 bias_scaling=None,
                                 epsilon=1.0,
                                 gamma=1.0,
                                 recur_scaling=1.0):
    k_in, k_rec, k_bias = jax.random.split(key, 3)
    kernel = sparse_tensor_init(k_in, input_size, units,
                                min(connectivity_input, units)) * input_scaling
    W = skewsymmetric(k_rec, units, recur_scaling)
    recurrent_kernel = W - gamma * jnp.eye(units, dtype=jnp.float32)
    if bias_bool:
        b_scale = input_scaling if bias_scaling is None else bias_scaling
        bias = (2.0 * jax.random.uniform(k_bias, (units,), jnp.float32) - 1.0) * b_scale
    else:
        bias = jnp.zeros((units,), jnp.float32)
    return kernel, recurrent_kernel, bias, float(epsilon)


# --------------------------------- reference ----------------------------------

def euler_reservoir_cell_ref(xt, h_prev, kernel, recurrent_kernel, bias, epsilon,
                             nonlin="tanh", weight_dtype=jnp.bfloat16):
    """Reference with matching bf16-cast matmul operands, f32 accumulation."""
    f32 = jnp.float32
    xk = xt.astype(weight_dtype).astype(f32)
    hk = h_prev.astype(weight_dtype).astype(f32)
    win = kernel.astype(weight_dtype).astype(f32)
    wrec = recurrent_kernel.astype(weight_dtype).astype(f32)
    pre = (jnp.dot(xk, win, precision=jax.lax.Precision.HIGHEST)
           + bias
           + jnp.dot(hk, wrec, precision=jax.lax.Precision.HIGHEST))
    act = pre if nonlin == "identity" else jnp.tanh(pre)
    out = h_prev + act * epsilon
    return out, out


# ----------------------------------- main --------------------------------------

if __name__ == "__main__":
    key = jax.random.PRNGKey(0)
    k_param, k_x, k_h = jax.random.split(key, 3)

    B = 4            # batch
    input_size = 8
    units = 32
    T = 3            # short recurrence to exercise the state path

    kernel, recurrent_kernel, bias, epsilon = build_euler_reservoir_params(
        k_param, input_size, units,
        input_scaling=1.0, connectivity_input=10,
        bias_bool=True, epsilon=1.0, gamma=1.0, recur_scaling=1.0)

    # One-time padded / bf16 parameter preparation (outside hot path).
    params = prepare_euler_reservoir_params(kernel, recurrent_kernel, bias, epsilon)
    cell = make_euler_cell(params)

    xs = jax.random.normal(k_x, (T, B, input_size), jnp.float32)
    h0 = jax.random.normal(k_h, (B, units), jnp.float32)

    h = h0
    h_ref = h0
    for t in range(T):
        h, _ = cell(xs[t], h)
        h_ref, _ = euler_reservoir_cell_ref(xs[t], h_ref, kernel,
                                            recurrent_kernel, bias, epsilon)
    h = jax.block_until_ready(h)

    assert h.shape == (B, units)
    err = float(jnp.max(jnp.abs(h - h_ref)))
    assert jnp.allclose(h, h_ref, atol=2e-3, rtol=2e-3), \
        f"mismatch vs reference: max abs err = {err:e}"

    print("KERNEL_OK")
</pallas_src>

<mosaic_0001>
module attributes {stable_mosaic.version = 11 : i64} {
  func.func @_euler_cell_kernel(%arg0: i32, %arg1: i32, %arg2: i32, %arg3: memref<8x16xf32, #tpu.memory_space<vmem>>, %arg4: memref<8x128xf32, #tpu.memory_space<vmem>>, %arg5: memref<8x128xf32, #tpu.memory_space<vmem>>, %arg6: memref<16x128xbf16, #tpu.memory_space<vmem>>, %arg7: memref<128x128xbf16, #tpu.memory_space<vmem>>, %arg8: memref<1x128xf32, #tpu.memory_space<vmem>>, %arg9: memref<8x128xf32, #tpu.memory_space<vmem>>, %arg10: memref<8x128xf32, #tpu.memory_space<vmem>>) attributes {dimension_semantics = [#tpu.dimension_semantics<parallel>, #tpu.dimension_semantics<parallel>, #tpu.dimension_semantics<arbitrary>], iteration_bounds = array<i64: 1, 1, 1>, scalar_prefetch = 0 : i64, scratch_operands = 1 : i64, tpu.core_type = #tpu.core_type<tc>, window_params = [{transform_indices = @transform_0, window_bounds = array<i64: 8, 16>}, {transform_indices = @transform_1, window_bounds = array<i64: 8, 128>}, {transform_indices = @transform_2, window_bounds = array<i64: 8, 128>}, {transform_indices = @transform_3, window_bounds = array<i64: 16, 128>}, {transform_indices = @transform_4, window_bounds = array<i64: 128, 128>}, {transform_indices = @transform_5, window_bounds = array<i64: 1, 128>}, {transform_indices = @transform_6, window_bounds = array<i64: 8, 128>}]} {
    %c0_i32 = arith.constant 0 : i32
    %0 = arith.cmpi eq, %arg2, %c0_i32 : i32
    %1 = arith.extui %0 : i1 to i32
    %c0_i32_0 = arith.constant 0 : i32
    %2 = arith.cmpi ne, %1, %c0_i32_0 : i32
    scf.if %2 {
      %c0_10 = arith.constant 0 : index
      %c0_11 = arith.constant 0 : index
      %13 = vector.load %arg3[%c0_10, %c0_11] : memref<8x16xf32, #tpu.memory_space<vmem>>, vector<8x16xf32>
      %14 = arith.truncf %13 : vector<8x16xf32> to vector<8x16xbf16>
      %c0_12 = arith.constant 0 : index
      %c0_13 = arith.constant 0 : index
      %15 = vector.load %arg6[%c0_12, %c0_13] : memref<16x128xbf16, #tpu.memory_space<vmem>>, vector<16x128xbf16>
      %cst_14 = arith.constant dense<0.000000e+00> : vector<8x128xf32>
      %16 = tpu.matmul %14, %15, %cst_14 {dimension_numbers = #tpu.dot_dimension_numbers<[1], [0], [0], [1], [0, 0, 1, 1], [], []>} : vector<8x16xbf16>, vector<16x128xbf16>, vector<8x128xf32> -> vector<8x128xf32>
      %c0_15 = arith.constant 0 : index
      %c0_16 = arith.constant 0 : index
      %17 = vector.load %arg8[%c0_15, %c0_16] : memref<1x128xf32, #tpu.memory_space<vmem>>, vector<1x128xf32>
      %18 = vector.broadcast %17 : vector<1x128xf32> to vector<8x128xf32>
      %19 = arith.addf %16, %18 : vector<8x128xf32>
      %c0_17 = arith.constant 0 : index
      %c0_18 = arith.constant 0 : index
      %20 = vector.load %arg10[%c0_17, %c0_18] : memref<8x128xf32, #tpu.memory_space<vmem>>, vector<8x128xf32>
      tpu.vector_store %arg10[%c0_17, %c0_18], %19 {strides = array<i32>} : memref<8x128xf32, #tpu.memory_space<vmem>>, vector<8x128xf32>,
    } else {
    }
    %c0 = arith.constant 0 : index
    %c0_1 = arith.constant 0 : index
    %3 = vector.load %arg4[%c0, %c0_1] : memref<8x128xf32, #tpu.memory_space<vmem>>, vector<8x128xf32>
    %4 = arith.truncf %3 : vector<8x128xf32> to vector<8x128xbf16>
    %c0_2 = arith.constant 0 : index
    %c0_3 = arith.constant 0 : index
    %5 = vector.load %arg10[%c0_2, %c0_3] : memref<8x128xf32, #tpu.memory_space<vmem>>, vector<8x128xf32>
    %c0_4 = arith.constant 0 : index
    %c0_5 = arith.constant 0 : index
    %6 = vector.load %arg7[%c0_4, %c0_5] : memref<128x128xbf16, #tpu.memory_space<vmem>>, vector<128x128xbf16>
    %cst = arith.constant dense<0.000000e+00> : vector<8x128xf32>
    %7 = tpu.matmul %4, %6, %cst {dimension_numbers = #tpu.dot_dimension_numbers<[1], [0], [0], [1], [0, 0, 1, 1], [], []>} : vector<8x128xbf16>, vector<128x128xbf16>, vector<8x128xf32> -> vector<8x128xf32>
    %8 = arith.addf %5, %7 : vector<8x128xf32>
    %c0_6 = arith.constant 0 : index
    %c0_7 = arith.constant 0 : index
    %9 = vector.load %arg10[%c0_6, %c0_7] : memref<8x128xf32, #tpu.memory_space<vmem>>, vector<8x128xf32>
    tpu.vector_store %arg10[%c0_6, %c0_7], %8 {strides = array<i32>} : memref<8x128xf32, #tpu.memory_space<vmem>>, vector<8x128xf32>,
    %c0_i32_8 = arith.constant 0 : i32
    %10 = arith.cmpi eq, %arg2, %c0_i32_8 : i32
    %11 = arith.extui %10 : i1 to i32
    %c0_i32_9 = arith.constant 0 : i32
    %12 = arith.cmpi ne, %11, %c0_i32_9 : i32
    scf.if %12 {
      %c0_10 = arith.constant 0 : index
      %c0_11 = arith.constant 0 : index
      %13 = vector.load %arg10[%c0_10, %c0_11] : memref<8x128xf32, #tpu.memory_space<vmem>>, vector<8x128xf32>
      %14 = math.tanh %13 : vector<8x128xf32>
      %c0_12 = arith.constant 0 : index
      %c0_13 = arith.constant 0 : index
      %15 = vector.load %arg5[%c0_12, %c0_13] : memref<8x128xf32, #tpu.memory_space<vmem>>, vector<8x128xf32>
      %cst_14 = arith.constant 1.000000e+00 : f32
      %16 = vector.broadcast %cst_14 : f32 to vector<8x128xf32>
      %17 = arith.mulf %14, %16 : vector<8x128xf32>
      %18 = arith.addf %15, %17 : vector<8x128xf32>
      %c0_15 = arith.constant 0 : index
      %c0_16 = arith.constant 0 : index
      %19 = vector.load %arg9[%c0_15, %c0_16] : memref<8x128xf32, #tpu.memory_space<vmem>>, vector<8x128xf32>
      tpu.vector_store %arg9[%c0_15, %c0_16], %18 {strides = array<i32>} : memref<8x128xf32, #tpu.memory_space<vmem>>, vector<8x128xf32>,
    } else {
    }
    return
  }
  func.func @transform_0(%arg0: i32, %arg1: i32, %arg2: i32) -> (i32, i32) {
    %c0_i32 = arith.constant 0 : i32
    %c0_i32_0 = arith.constant 0 : i32
    return %arg0, %c0_i32 : i32, i32
  }
  func.func @transform_1(%arg0: i32, %arg1: i32, %arg2: i32) -> (i32, i32) {
    %c0_i32 = arith.constant 0 : i32
    return %arg0, %arg2 : i32, i32
  }
  func.func @transform_2(%arg0: i32, %arg1: i32, %arg2: i32) -> (i32, i32) {
    %c0_i32 = arith.constant 0 : i32
    return %arg0, %arg1 : i32, i32
  }
  func.func @transform_3(%arg0: i32, %arg1: i32, %arg2: i32) -> (i32, i32) {
    %c0_i32 = arith.constant 0 : i32
    %c0_i32_0 = arith.constant 0 : i32
    return %c0_i32, %arg1 : i32, i32
  }
  func.func @transform_4(%arg0: i32, %arg1: i32, %arg2: i32) -> (i32, i32) {
    %c0_i32 = arith.constant 0 : i32
    return %arg2, %arg1 : i32, i32
  }
  func.func @transform_5(%arg0: i32, %arg1: i32, %arg2: i32) -> (i32, i32) {
    %c0_i32 = arith.constant 0 : i32
    %c0_i32_0 = arith.constant 0 : i32
    return %c0_i32, %arg1 : i32, i32
  }
  func.func @transform_6(%arg0: i32, %arg1: i32, %arg2: i32) -> (i32, i32) {
    %c0_i32 = arith.constant 0 : i32
    return %arg0, %arg1 : i32, i32
  }
}

</mosaic_0001>

<bundles_post_ra>
// kernel: step.1
= control target key start
LH: loop header
LB: loop body
LE: loop exit
PB: predicated region body
PF: predicated region fallthrough
CT: control target
= control target key end

     0   :  { %11 = vsyncpa [#allocation4], 0  ;;  %s312_s21 = smov [#allocation3]   ;;  %s373_s0 = inlined_call_operand.vmem [shape: f32[8,16], index: 0, kind: input, shape index: {}]   ;;  %s374_s1 = inlined_call_operand.vmem [shape: f32[8,128], index: 1, kind: input, shape index: {}, may-alias: {1,2}]   ;;  %s375_s2 = inlined_call_operand.vmem [shape: f32[8,128], index: 2, kind: input, shape index: {}, may-alias: {1,2}]   ;;  %s376_s3 = inlined_call_operand.vmem [shape: bf16[16,128], index: 3, kind: input, shape index: {}]   ;;  %s377_s4 = inlined_call_operand.hbm [shape: bf16[128,128], index: 4, kind: input, shape index: {}]   ;;  %s378_s5 = inlined_call_operand.vmem [shape: f32[1,128], index: 5, kind: input, shape index: {}]   ;;  %s379_s6 = inlined_call_operand.vmem [shape: f32[8,128], index: 6, kind: output, shape index: {}]  }
   0x1   :  { %s25_s22 = sshll.u32 %s312_s21, 4  ;;  %s26_s22 = int_to_ptr.vmem [resolvable:$true] %s25_s22 }
   0x2   :  { %s298_s23 = scalar_lea.vmem %s26_s22, 1024  ;;  %p303_p1 = scmp.lt.s32.totalorder %s26_s22, %s26_s22 }
   0x3   :  { %p299_p0 = scmp.ne.s32.totalorder %s26_s22, %s298_s23  ;;  %p304_p2 = scmp.lt.s32.totalorder %s298_s23, %s298_s23 }
   0x5   :  { %p305_p3 = por %p304_p2, %p303_p1 }
   0x7   :  { %p306_p4 = pnand %p305_p3, %p299_p0 }
   0x9   :  { %309 = shalt.err (!%p306_p4)
}
   0xa   :  { %s313_s24 = smov 64   ;;  %s314_s25 = smov 4  }
   0xb   :  { %31 = dma.hbm_to_vmem [thread:$0]  %s377_s4, 1024, %s26_s22, [#allocation4], %s313_s24, %s313_s24, %s314_s25  }
   0xc   :  { %310 = dma.done.wait [#allocation4], 1024  }
   0xd   :  { %311 = vsyncadd [#allocation4], 4294966272  ;;  %v315_v0 = vmov 0.0   ;;  %vm316_vm0 = vmmov 0   ;;  %v279_v1 = vld [vmem:[#allocation3 + $0x38] sm:$0xff]   ;;  %v280_v2 = vld [vmem:[#allocation3 + $0x30] sm:$0xff]  }
   0xe   :  { %254 = vmatprep.subr.bf16.mxu1 %v315_v0  ;;  %248 = vmatprep.subr.bf16.mxu0 %v315_v0  ;;  %v284_v3 = vld [vmem:[%s376_s3] sm:$0xff]   ;;  %v281_v4 = vld [vmem:[#allocation3 + $0x28] sm:$0xff]   ;;  %vm59_vm1 = vcmask 130048   ;;  %v283_v8 = vld [vmem:[#allocation3 + $0x18] sm:$0xff]  }
   0xf   :  { %250 = vmatprep.mubr.msk.bf16.mxu0 %vm316_vm0, %v315_v0  ;;  %270 = vmatprep.mubr.msk.bf16.mxu1 %vm316_vm0, %v315_v0  ;;  %v42_v5 = vld [vmem:[%s373_s0] sm:$0xff]  ;;  %v285_v9 = vld [vmem:[#allocation3 + $0x10] sm:$0xff]   ;;  %v286_v10 = vld [vmem:[#allocation3 + $0x8] sm:$0xff]  }
  0x10   :  { %255 = vmatpush3.bf16.msra.mxu1 %v279_v1  ;;  %249 = vmatpush3.bf16.msra.mxu0 %v284_v3  ;;  %v43_v6 = vpack.c.bf16 %v42_v5, %v42_v5  ;;  %v282_v7 = vld [vmem:[#allocation3 + $0x20] sm:$0xff]  }
  0x11   :  { %256 = vmatprep.subr.bf16.mxu1 %v315_v0  ;;  %v287_v11 = vld [vmem:[#allocation3] sm:$0xff]  }
  0x12   :  { %v104_v12 = vld [vmem:[%s374_s1] sm:$0xff] }
  0x13   :  { %251 = vmatmul.mubr.msk.bf16.vlgmr.msra.gmra.mxu0 %vm59_vm1, %v43_v6  ;;  %v105_v13 = vpack.c.bf16 %v104_v12, %v104_v12  ;;  %v226_v18 = vld [vmem:[%s378_s5] ss:$0 sm:$0xff] }
  0x14   :  { %257 = vmatpush3.bf16.msra.mxu1 %v280_v2  ;;  %v218_v25 = vld [vmem:[%s375_s2] sm:$0xff] }
  0x15   :  { %258 = vmatprep.subr.bf16.mxu1 %v315_v0 }
  0x18   :  { %259 = vmatpush3.bf16.msra.mxu1 %v281_v4 }
  0x19   :  { %260 = vmatprep.subr.bf16.mxu1 %v315_v0 }
  0x1c   :  { %261 = vmatpush3.bf16.msra.mxu1 %v282_v7 }
  0x1d   :  { %262 = vmatprep.subr.bf16.mxu1 %v315_v0 }
  0x20   :  { %263 = vmatpush3.bf16.msra.mxu1 %v283_v8 }
  0x21   :  { %264 = vmatprep.subr.bf16.mxu1 %v315_v0 }
  0x24   :  { %265 = vmatpush3.bf16.msra.mxu1 %v285_v9 }
  0x25   :  { %266 = vmatprep.subr.bf16.mxu1 %v315_v0 }
  0x28   :  { %267 = vmatpush3.bf16.msra.mxu1 %v286_v10 }
  0x29   :  { %268 = vmatprep.subr.bf16.mxu1 %v315_v0 }
  0x2c   :  { %269 = vmatpush3.bf16.msra.mxu1 %v287_v11 }
  0x2f   :  { %271 = vmatmul.mubr.bf16.vlgmr.msra.gmra.mxu1 %v105_v13 }
  0xd3   :  { %v97_v14 = vpop.f32.mrf.mxu0 }
  0xd4   :  { %v98_v19 = vadd.f32 %v226_v18, %v97_v14 }
  0xd5   :  { %v252_v15 = vpop.f32.mrf.mxu0 }
  0xd7   :  { %v100_v16 = vpop.f32.mrf.mxu0 }
  0xd9   :  { %v253_v17 = vpop.f32.mrf.mxu0 }
  0xef   :  { %v205_v20 = vpop.f32.mrf.mxu1 }
  0xf0   :  { %v211_v21 = vadd.f32 %v205_v20, %v98_v19 }
  0xf1   :  { %v272_v22 = vpop.f32.mrf.mxu1 }
  0xf2   :  { %288 = vtanh.f32 %v211_v21 }
  0xf3   :  { %v208_v23 = vpop.f32.mrf.mxu1 }
  0xf5   :  { %v273_v24 = vpop.f32.mrf.mxu1 }
  0xff   :  { %v289_v26 = vpop.eup %288 }
 0x100   :  { %v219_v27 = vadd.f32 %v289_v26, %v218_v25 }
 0x102   :  { %220 = vst [vmem:[%s379_s6] sm:$0xff] %v219_v27 }
 0x103   :  { %225 = vsyncpa [#allocation4], 1 }

</bundles_post_ra>
